<compile_context>
chip_gen: v6e
topology: v6e:2x2x1
jax: 0.10.0
libtpu: 0.0.40
codegen_flags: <defaults>
</compile_context>

<pallas_src>
import functools
import math

import jax
import jax.numpy as jnp
from jax.experimental import pallas as pl
from jax.experimental.pallas import tpu as pltpu

LANES = 128        # lane width (last-dim tile)
SUBLANES = 8       # sublane rows per f32 vreg
TM_TARGET = 1024   # rows per grid step (512 KiB / input / step at f32)
NCORES = 2         # megacore split for v7x; harmless elsewhere


def _round_up(x, m):
    return -(-x // m) * m


def _slide_loss_kernel(thr_lo, thr_hi, a2, tm, steps_per_core, n_valid,
                       needs_mask, pred_ref, true_ref, out_ref):
    """One grid step: elementwise BCE-with-logits * slide weight, accumulate.

    out_ref is an (8, 128) f32 partial-sum block, resident across the
    reduction axis (grid axis 1) and private to each parallel slice
    (grid axis 0).  Final cross-lane reduce + divide happen in the wrapper.
    """
    c = pl.program_id(0)
    j = pl.program_id(1)

    @pl.when(j == 0)
    def _init():
        out_ref[...] = jnp.zeros_like(out_ref)

    x = pred_ref[...].astype(jnp.float32)
    y = true_ref[...].astype(jnp.float32)

    # BCEWithLogitsLoss(reduction='none'), numerically stable:
    #   max(x, 0) - x*y + log(1 + exp(-|x|))
    loss = jnp.maximum(x, 0.0) - x * y + jnp.log1p(jnp.exp(-jnp.abs(x)))

    # Slide modulating weight via a select chain (mutually exclusive bands):
    #   y <= iou-0.1       -> 1.0
    #   iou-0.1 < y < iou  -> exp(1 - iou)   (a2, compile-time constant)
    #   y >= iou           -> exp(1 - y)
    w = jnp.where(y >= thr_hi, jnp.exp(1.0 - y),
                  jnp.where(y > thr_lo, a2, 1.0))

    v = loss * w  # (tm, 128) f32

    if needs_mask:
        # Zero contributions from out-of-range elements (partial edge blocks,
        # grid over-coverage, lane-tail padding).  A single select is exact
        # and safe: garbage -> anything -> select picks literal 0.0.
        row0 = (c * steps_per_core + j) * tm            # nominal, unclamped
        ridx = jax.lax.broadcasted_iota(jnp.int32, (tm, LANES), 0)
        lidx = jax.lax.broadcasted_iota(jnp.int32, (tm, LANES), 1)
        flat = (row0 + ridx) * LANES + lidx
        v = jnp.where(flat < n_valid, v, 0.0)

    # Fold sublane groups into an (8, 128) partial sum using only vreg adds
    # (static, tile-aligned slices; no cross-lane XLU reduce in the loop).
    part = v[0:SUBLANES, :]
    for r in range(SUBLANES, tm, SUBLANES):
        part = part + v[r:r + SUBLANES, :]
    out_ref[...] += part


def slide_loss(pred, true, auto_iou=0.5, reduction="mean"):
    """Pallas SlideLoss(BCEWithLogitsLoss) forward. Returns a scalar f32."""
    # PyTorch: if auto_iou < 0.2: auto_iou = 0.2  (plain Python float)
    auto_iou = max(float(auto_iou), 0.2)
    thr_lo = auto_iou - 0.1
    thr_hi = auto_iou
    a2 = math.exp(1.0 - auto_iou)

    if reduction not in ("mean", "sum"):
        # TODO(synk): reduction='none' (full elementwise tensor output) not wired up.
        raise NotImplementedError("only 'mean' and 'sum' reductions implemented")

    n = int(pred.size)
    p = pred.reshape(-1)   # keep native dtype; cast happens in-kernel
    t = true.reshape(-1)

    # Only a tiny (<128 element) pad is ever made, and only when n % 128 != 0,
    # so the flat buffer can be viewed as (rows, 128).  All other tail handling
    # is done in-kernel with the flat-index mask (no full-array copies).
    rem = n % LANES
    if rem:
        pad = LANES - rem
        p = jnp.pad(p, (0, pad))
        t = jnp.pad(t, (0, pad))
    rows = -(-n // LANES)                                  # ceil(n / 128)

    # Row-block alignment: 8 for 32-bit dtypes, 16 for 16-bit, 32 for 8-bit.
    itemsize = min(jnp.dtype(p.dtype).itemsize, jnp.dtype(t.dtype).itemsize)
    row_align = max(SUBLANES, 32 // max(int(itemsize), 1))

    tm = min(TM_TARGET, _round_up(rows, row_align))        # rows per grid step
    steps_total = -(-rows // tm)
    ncores = NCORES if steps_total >= NCORES else 1
    steps_per_core = -(-steps_total // ncores)
    covered_rows = ncores * steps_per_core * tm
    needs_mask = covered_rows * LANES > n
    last_block = steps_total - 1

    p2 = p.reshape(rows, LANES)
    t2 = t.reshape(rows, LANES)

    def in_idx(c, j):
        # Clamp so no block starts past the (possibly partial) last block;
        # over-covered duplicates are zeroed by the in-kernel mask.
        return (jnp.minimum(c * steps_per_core + j, last_block), 0)

    kernel = functools.partial(_slide_loss_kernel, thr_lo, thr_hi, a2, tm,
                               steps_per_core, n, needs_mask)

    partials = pl.pallas_call(
        kernel,
        out_shape=jax.ShapeDtypeStruct((ncores * SUBLANES, LANES), jnp.float32),
        grid=(ncores, steps_per_core),
        in_specs=[
            pl.BlockSpec((tm, LANES), in_idx),
            pl.BlockSpec((tm, LANES), in_idx),
        ],
        out_specs=pl.BlockSpec((SUBLANES, LANES), lambda c, j: (c, 0)),
        compiler_params=pltpu.CompilerParams(
            dimension_semantics=("parallel", "arbitrary"),
        ),
    )(p2, t2)

    total = jnp.sum(partials)
    if reduction == "mean":
        return total / jnp.float32(n)
    return total


def _reference_slide_loss(pred, true, auto_iou=0.5):
    """Pure-JAX reference mirroring the PyTorch module (BCEWithLogits + mean)."""
    auto_iou = max(float(auto_iou), 0.2)
    x = pred.astype(jnp.float32)
    y = true.astype(jnp.float32)
    loss = jnp.maximum(x, 0.0) - x * y + jnp.log1p(jnp.exp(-jnp.abs(x)))
    b1 = (y <= auto_iou - 0.1).astype(jnp.float32)
    b2 = ((y > auto_iou - 0.1) & (y < auto_iou)).astype(jnp.float32)
    b3 = (y >= auto_iou).astype(jnp.float32)
    a2 = math.exp(1.0 - auto_iou)
    a3 = jnp.exp(-(y - 1.0))
    w = 1.0 * b1 + a2 * b2 + a3 * b3
    return (loss * w).mean()


if __name__ == "__main__":
    key = jax.random.PRNGKey(0)
    k1, k2, k3, k4 = jax.random.split(key, 4)

    # Case 1: aligned shape (n % 128 == 0) -> zero-copy, mask-free path.
    B, C, H, W = 2, 4, 16, 16          # NCHW, like the PyTorch inputs
    pred = jax.random.normal(k1, (B, C, H, W), dtype=jnp.float32)   # logits
    true = jax.random.uniform(k2, (B, C, H, W), dtype=jnp.float32)  # iou-like targets in [0,1]
    out = jax.block_until_ready(slide_loss(pred, true, auto_iou=0.5))
    ref = _reference_slide_loss(pred, true, auto_iou=0.5)
    assert jnp.allclose(out, ref, rtol=1e-5, atol=1e-5), (out, ref)

    # Case 2: ragged shape (n % 128 != 0) -> exercises the in-kernel tail mask.
    pred2 = jax.random.normal(k3, (2, 3, 5, 7), dtype=jnp.float32)
    true2 = jax.random.uniform(k4, (2, 3, 5, 7), dtype=jnp.float32)
    out2 = jax.block_until_ready(slide_loss(pred2, true2, auto_iou=0.35))
    ref2 = _reference_slide_loss(pred2, true2, auto_iou=0.35)
    assert jnp.allclose(out2, ref2, rtol=1e-5, atol=1e-5), (out2, ref2)

    print("KERNEL_OK")
</pallas_src>

<mosaic_0001>
module attributes {stable_mosaic.version = 11 : i64} {
  func.func @_slide_loss_kernel(%arg0: i32, %arg1: i32, %arg2: memref<16x128xf32, #tpu.memory_space<vmem>>, %arg3: memref<16x128xf32, #tpu.memory_space<vmem>>, %arg4: memref<8x128xf32, #tpu.memory_space<vmem>>) attributes {dimension_semantics = [#tpu.dimension_semantics<parallel>, #tpu.dimension_semantics<arbitrary>], iteration_bounds = array<i64: 1, 1>, scalar_prefetch = 0 : i64, scratch_operands = 0 : i64, tpu.core_type = #tpu.core_type<tc>, window_params = [{transform_indices = @transform_0, window_bounds = array<i64: 16, 128>}, {transform_indices = @transform_1, window_bounds = array<i64: 16, 128>}, {transform_indices = @transform_2, window_bounds = array<i64: 8, 128>}]} {
    %c0_i32 = arith.constant 0 : i32
    %0 = arith.cmpi eq, %arg1, %c0_i32 : i32
    %1 = arith.extui %0 : i1 to i32
    %c0_i32_0 = arith.constant 0 : i32
    %2 = arith.cmpi ne, %1, %c0_i32_0 : i32
    scf.if %2 {
      %cst_14 = arith.constant 0.000000e+00 : f32
      %33 = vector.broadcast %cst_14 : f32 to vector<8x128xf32>
      %c0_15 = arith.constant 0 : index
      %c0_16 = arith.constant 0 : index
      %34 = vector.load %arg4[%c0_15, %c0_16] : memref<8x128xf32, #tpu.memory_space<vmem>>, vector<8x128xf32>
      tpu.vector_store %arg4[%c0_15, %c0_16], %33 {strides = array<i32>} : memref<8x128xf32, #tpu.memory_space<vmem>>, vector<8x128xf32>,
    } else {
    }
    %c0 = arith.constant 0 : index
    %c0_1 = arith.constant 0 : index
    %3 = vector.load %arg2[%c0, %c0_1] : memref<16x128xf32, #tpu.memory_space<vmem>>, vector<16x128xf32>
    %c0_2 = arith.constant 0 : index
    %c0_3 = arith.constant 0 : index
    %4 = vector.load %arg3[%c0_2, %c0_3] : memref<16x128xf32, #tpu.memory_space<vmem>>, vector<16x128xf32>
    %cst = arith.constant 0.000000e+00 : f32
    %5 = vector.broadcast %cst : f32 to vector<16x128xf32>
    %6 = arith.maximumf %3, %5 : vector<16x128xf32>
    %7 = arith.mulf %3, %4 : vector<16x128xf32>
    %8 = arith.subf %6, %7 : vector<16x128xf32>
    %9 = math.absf %3 : vector<16x128xf32>
    %cst_4 = arith.constant 0.000000e+00 : f32
    %10 = vector.broadcast %cst_4 : f32 to vector<16x128xf32>
    %11 = arith.subf %10, %9 : vector<16x128xf32>
    %12 = math.exp %11 : vector<16x128xf32>
    %13 = math.log1p %12 : vector<16x128xf32>
    %14 = arith.addf %8, %13 : vector<16x128xf32>
    %cst_5 = arith.constant 5.000000e-01 : f32
    %15 = vector.broadcast %cst_5 : f32 to vector<16x128xf32>
    %16 = arith.cmpf oge, %4, %15 : vector<16x128xf32>
    %cst_6 = arith.constant 1.000000e+00 : f32
    %17 = vector.broadcast %cst_6 : f32 to vector<16x128xf32>
    %18 = arith.subf %17, %4 : vector<16x128xf32>
    %19 = math.exp %18 : vector<16x128xf32>
    %cst_7 = arith.constant 4.000000e-01 : f32
    %20 = vector.broadcast %cst_7 : f32 to vector<16x128xf32>
    %21 = arith.cmpf ogt, %4, %20 : vector<16x128xf32>
    %cst_8 = arith.constant 1.64872122 : f32
    %cst_9 = arith.constant 1.000000e+00 : f32
    %22 = vector.broadcast %cst_8 : f32 to vector<16x128xf32>
    %23 = vector.broadcast %cst_9 : f32 to vector<16x128xf32>
    %24 = arith.select %21, %22, %23 : vector<16x128xi1>, vector<16x128xf32>
    %25 = arith.select %16, %19, %24 : vector<16x128xi1>, vector<16x128xf32>
    %26 = arith.mulf %14, %25 : vector<16x128xf32>
    %27 = vector.extract_strided_slice %26 {offsets = [0, 0], sizes = [8, 128], strides = [1, 1]} : vector<16x128xf32> to vector<8x128xf32>
    %28 = vector.extract_strided_slice %26 {offsets = [8, 0], sizes = [8, 128], strides = [1, 1]} : vector<16x128xf32> to vector<8x128xf32>
    %29 = arith.addf %27, %28 : vector<8x128xf32>
    %c0_10 = arith.constant 0 : index
    %c0_11 = arith.constant 0 : index
    %30 = vector.load %arg4[%c0_10, %c0_11] : memref<8x128xf32, #tpu.memory_space<vmem>>, vector<8x128xf32>
    %31 = arith.addf %30, %29 : vector<8x128xf32>
    %c0_12 = arith.constant 0 : index
    %c0_13 = arith.constant 0 : index
    %32 = vector.load %arg4[%c0_12, %c0_13] : memref<8x128xf32, #tpu.memory_space<vmem>>, vector<8x128xf32>
    tpu.vector_store %arg4[%c0_12, %c0_13], %31 {strides = array<i32>} : memref<8x128xf32, #tpu.memory_space<vmem>>, vector<8x128xf32>,
    return
  }
  func.func @transform_0(%arg0: i32, %arg1: i32) -> (i32, i32) {
    %c1_i32 = arith.constant 1 : i32
    %0 = arith.muli %arg0, %c1_i32 : i32
    %1 = arith.addi %0, %arg1 : i32
    %c0_i32 = arith.constant 0 : i32
    %2 = arith.minsi %1, %c0_i32 : i32
    %c0_i32_0 = arith.constant 0 : i32
    %c0_i32_1 = arith.constant 0 : i32
    return %2, %c0_i32_0 : i32, i32
  }
  func.func @transform_1(%arg0: i32, %arg1: i32) -> (i32, i32) {
    %c1_i32 = arith.constant 1 : i32
    %0 = arith.muli %arg0, %c1_i32 : i32
    %1 = arith.addi %0, %arg1 : i32
    %c0_i32 = arith.constant 0 : i32
    %2 = arith.minsi %1, %c0_i32 : i32
    %c0_i32_0 = arith.constant 0 : i32
    %c0_i32_1 = arith.constant 0 : i32
    return %2, %c0_i32_0 : i32, i32
  }
  func.func @transform_2(%arg0: i32, %arg1: i32) -> (i32, i32) {
    %c0_i32 = arith.constant 0 : i32
    %c0_i32_0 = arith.constant 0 : i32
    return %arg0, %c0_i32 : i32, i32
  }
}

</mosaic_0001>

<bundles_post_ra>
// kernel: tpu_custom_call.1
= control target key start
LH: loop header
LB: loop body
LE: loop exit
PB: predicated region body
PF: predicated region fallthrough
CT: control target
= control target key end

     0   :  { %7 = vsyncpa [#allocation3], 0  ;;  %s259_s0 = inlined_call_operand.hbm [shape: f32[16,128], index: 0, kind: input, shape index: {}]   ;;  %s260_s1 = inlined_call_operand.hbm [shape: f32[16,128], index: 1, kind: input, shape index: {}]   ;;  %s261_s2 = inlined_call_operand.hbm [shape: f32[8,128], index: 2, kind: output, shape index: {}]  }
   0x1   :  { %8 = vsyncpa [#allocation6], 0 }
   0x2   :  { %9 = vsyncpa [#allocation4], 0  ;;  %s228_s9 = smov [#allocation2]  }
   0x3   :  { %s21_s10 = sshll.u32 %s228_s9, 4  ;;  %s22_s10 = int_to_ptr.vmem [resolvable:$true] %s21_s10 }
   0x4   :  { %s170_s11 = scalar_lea.vmem %s22_s10, 256  ;;  %p175_p1 = scmp.lt.s32.totalorder %s22_s10, %s22_s10 }
   0x5   :  { %p171_p0 = scmp.ne.s32.totalorder %s22_s10, %s170_s11  ;;  %p176_p2 = scmp.lt.s32.totalorder %s170_s11, %s170_s11 }
   0x7   :  { %p177_p3 = por %p176_p2, %p175_p1 }
   0x9   :  { %p178_p4 = pnand %p177_p3, %p171_p0 }
   0xb   :  { %181 = shalt.err (!%p178_p4)
}
   0xc   :  { %s229_s12 = smov 128   ;;  %s230_s13 = smov 8  }
   0xd   :  { %27 = dma.hbm_to_vmem [thread:$0]  %s259_s0, 256, %s22_s10, [#allocation3], %s229_s12, %s229_s12, %s230_s13  }
   0xe   :  { %s231_s16 = smov [#allocation5]  }
   0xf   :  { %s39_s17 = sshll.u32 %s231_s16, 4  ;;  %s40_s17 = int_to_ptr.vmem [resolvable:$true] %s39_s17 }
  0x10   :  { %s190_s18 = scalar_lea.vmem %s40_s17, 256  ;;  %p195_p6 = scmp.lt.s32.totalorder %s40_s17, %s40_s17 }
  0x11   :  { %p191_p5 = scmp.ne.s32.totalorder %s40_s17, %s190_s18  ;;  %p196_p7 = scmp.lt.s32.totalorder %s190_s18, %s190_s18 }
  0x13   :  { %p197_p8 = por %p196_p7, %p195_p6 }
  0x15   :  { %p198_p9 = pnand %p197_p8, %p191_p5 }
  0x17   :  { %201 = shalt.err (!%p198_p9)
}
  0x18   :  { %45 = dma.hbm_to_vmem [thread:$0]  %s260_s1, 256, %s40_s17, [#allocation6], %s229_s12, %s229_s12, %s230_s13  }
  0x19   :  { %222 = dma.done.wait [#allocation3], 256  }
  0x1a   :  { %223 = vsyncadd [#allocation3], 4294967040 }
  0x1b   :  { %224 = dma.done.wait [#allocation6], 256  }
  0x1c   :  { %225 = vsyncadd [#allocation6], 4294967040  ;;  %v65_v0 = vld [vmem:[#allocation2] sm:$0xff]  ;;  %v66_v1 = vld [vmem:[#allocation2 + $0x8] sm:$0xff]  ;;  %v232_v34 = vmov 1.0   ;;  %s233_s0 = smov [#allocation7]  }
  0x1d   :  { %v75_v2 = vand.u32 2147483647, %v65_v0  ;;  %v76_v3 = vand.u32 2147483647, %v66_v1  ;;  %v67_v8 = vld [vmem:[#allocation5] sm:$0xff]  ;;  %v68_v9 = vld [vmem:[#allocation5 + $0x8] sm:$0xff] }
  0x1e   :  { %v105_v10 = vsub.f32 1.0, %v67_v8  ;;  %v106_v11 = vsub.f32 1.0, %v68_v9  ;;  %v69_v21 = vmax.f32 %v65_v0, 0.0  ;;  %v71_v22 = vmul.f32 %v67_v8, %v65_v0  ;;  %s129_s1 = sshll.u32 %s233_s0, 4  ;;  %s130_s1 = int_to_ptr.vmem [resolvable:$true] %s129_s1 }
  0x1f   :  { %v77_v4 = vsub.f32 0.0, %v75_v2  ;;  %v78_v5 = vsub.f32 0.0, %v76_v3  ;;  %v70_v25 = vmax.f32 %v66_v1, 0.0  ;;  %v72_v26 = vmul.f32 %v68_v9, %v66_v1  ;;  %s202_s21 = scalar_lea.vmem %s130_s1, 128  ;;  %p207_p11 = scmp.lt.s32.totalorder %s130_s1, %s130_s1 }
  0x20   :  { %v107_v12 = vmul.f32 1.442695, %v105_v10  ;;  %v109_v13 = vmul.f32 1.442695, %v106_v11  ;;  %vm111_vm0 = vcmp.gt.f32.partialorder %v67_v8, 0.4  ;;  %v73_v32 = vsub.f32 %v69_v21, %v71_v22  ;;  %p203_p10 = scmp.ne.s32.totalorder %s130_s1, %s202_s21  ;;  %p208_p12 = scmp.lt.s32.totalorder %s202_s21, %s202_s21 }
  0x21   :  { %v79_v6 = vmul.f32 1.442695, %v77_v4  ;;  %v81_v7 = vmul.f32 1.442695, %v78_v5  ;;  %vm112_vm1 = vcmp.gt.f32.partialorder %v68_v9, 0.4  ;;  %v74_v37 = vsub.f32 %v70_v25, %v72_v26 }
  0x22   :  { %vm103_vm2 = vcmp.ge.f32.partialorder %v67_v8, 0.5  ;;  %vm104_vm3 = vcmp.ge.f32.partialorder %v68_v9, 0.5  ;;  %v113_v35 = vsel %vm111_vm0, 1.6487212, %v232_v34  ;;  %v114_v39 = vsel %vm112_vm1, 1.6487212, %v232_v34  ;;  %p209_p13 = por %p208_p12, %p207_p11 }
  0x23   :  { %150 = vpow2.f32 %v79_v6 }
  0x24   :  { %152 = vpow2.f32 %v81_v7  ;;  %p210_p0 = pnand %p209_p13, %p203_p10 }
  0x25   :  { %154 = vpow2.f32 %v107_v12 }
  0x26   :  { %156 = vpow2.f32 %v109_v13 }
  0x30   :  { %v151_v14 = vpop.eup %150 }
  0x31   :  { %v153_v15 = vpop.eup %152  ;;  %v83_v16 = vadd.f32 1.0, %v151_v14  ;;  %v86_v18 = vmul.f32 -0.5, %v151_v14  ;;  %v89_v23 = vand.u32 2147483647, %v151_v14 }
  0x32   :  { %v92_v17 = vadd.f32 1.0, %v153_v15  ;;  %v95_v19 = vmul.f32 -0.5, %v153_v15  ;;  %v98_v27 = vand.u32 2147483647, %v153_v15  ;;  %v155_v28 = vpop.eup %154 }
  0x33   :  { %158 = vlog2.f32 %v83_v16  ;;  %v87_v20 = vadd.f32 1.0, %v86_v18  ;;  %v157_v29 = vpop.eup %156  ;;  %vm90_vm4 = vcmp.lt.f32.partialorder %v89_v23, 0.0004427343  ;;  %v115_v42 = vsel %vm103_vm2, %v155_v28, %v113_v35 }
  0x34   :  { %160 = vlog2.f32 %v92_v17  ;;  %v96_v24 = vadd.f32 1.0, %v95_v19  ;;  %vm99_vm5 = vcmp.lt.f32.partialorder %v98_v27, 0.0004427343  ;;  %v116_v45 = vsel %vm104_vm3, %v157_v29, %v114_v39 }
  0x35   :  { %v88_v30 = vmul.f32 %v151_v14, %v87_v20 }
  0x36   :  { %v97_v33 = vmul.f32 %v153_v15, %v96_v24 }
  0x40   :  { %v159_v31 = vpop.eup %158 }
  0x41   :  { %v161_v36 = vpop.eup %160  ;;  %v85_v38 = vmul.f32 0.6931472, %v159_v31 }
  0x42   :  { %v94_v40 = vmul.f32 0.6931472, %v161_v36 }
  0x43   :  { %v91_v41 = vsel %vm90_vm4, %v88_v30, %v85_v38 }
  0x44   :  { %v100_v43 = vsel %vm99_vm5, %v97_v33, %v94_v40  ;;  %v101_v44 = vadd.f32 %v91_v41, %v73_v32 }
  0x45   :  { %v102_v46 = vadd.f32 %v100_v43, %v74_v37 }
  0x46   :  { %v117_v47 = vmul.f32 %v115_v42, %v101_v44 }
  0x47   :  { %v118_v48 = vmul.f32 %v116_v45, %v102_v46 }
  0x49   :  { %v119_v49 = vadd.f32 %v118_v48, %v117_v47 }
  0x4b   :  { %122 = vst [vmem:[#allocation7] sm:$0xff] %v119_v49 }
  0x4c   :  { %213 = shalt.err (!%p210_p0)
}
  0x4d   :  { %132 = dma.vmem_to_hbm [thread:$0]  %s130_s1, 128, %s261_s2, [#allocation4]  }
  0x4e   :  { %226 = dma.done.wait [#allocation4], 128  }
  0x4f   :  { %227 = vsyncadd [#allocation4], 4294967168 }
  0x50   :  { %136 = vsyncpa [#allocation3], 1 }
  0x51   :  { %137 = vsyncpa [#allocation6], 1 }
  0x52   :  { %138 = vsyncpa [#allocation4], 1 }

</bundles_post_ra>
